<compile_context>
chip_gen: v5e
topology: v5e:2x2
jax: 0.10.0
libtpu: 0.0.40
codegen_flags: <defaults>
</compile_context>

<pallas_src>
import functools

import jax
import jax.numpy as jnp
from jax.experimental import pallas as pl
from jax.experimental.pallas import tpu as pltpu


_NEG_BIG = -1e30          # finite "-inf" for masked (padded) logit columns
_EPS_SQ = 1e-24           # (1e-12)**2 -> matches F.normalize eps in squared domain
_MIB = 1 << 20


def _round_up(x, m):
    return ((x + m - 1) // m) * m


def _pad_rows(x, rows):
    return x if x.shape[0] == rows else jnp.pad(x, ((0, rows - x.shape[0]), (0, 0)))


def _pad_cols(x, cols):
    return x if x.shape[1] == cols else jnp.pad(x, ((0, 0), (0, cols - x.shape[1])))


def _tpu_vmem_capacity_bytes():
    """Physical VMEM per core; falls back to 128 MiB (v5e/v6e) if unknown."""
    try:
        info = pltpu.get_tpu_info()
        for attr in ("vmem_capacity_bytes", "vmem_size_bytes", "vmem_bytes"):
            v = getattr(info, attr, None)
            if v:
                return int(v)
    except Exception:
        pass
    return 128 * _MIB


def _scoped_vmem_limit():
    # ~48 MiB on 64-MiB chips (v7x), ~100 MiB on 128-MiB chips (v5e/v6e).
    phys = _tpu_vmem_capacity_bytes()
    return int(min(max(phys - 16 * _MIB, 32 * _MIB), 100 * _MIB))


# ---------------------------------------------------------------------------
# Kernel 1a: fused q/p normalization + 1/T fold + positive logit.
#   qn = (q / max(||q||, eps)) * (1/T),  pn = p / max(||p||, eps),
#   pos = <qn, pn>  (already carries the 1/T scale).
# One HBM read of q and p instead of two normalize passes + a separate dot.
# ---------------------------------------------------------------------------
def _norm_qp_kernel(q_ref, p_ref, qn_ref, pn_ref, pos_ref, *, inv_t):
    q = q_ref[...].astype(jnp.float32)
    p = p_ref[...].astype(jnp.float32)
    q_inv = jax.lax.rsqrt(jnp.maximum(jnp.sum(q * q, axis=-1, keepdims=True), _EPS_SQ))
    p_inv = jax.lax.rsqrt(jnp.maximum(jnp.sum(p * p, axis=-1, keepdims=True), _EPS_SQ))
    qn = q * (q_inv * jnp.float32(inv_t))
    pn = p * p_inv
    pos_ref[...] = jnp.sum(qn * pn, axis=-1, keepdims=True)
    qn_ref[...] = qn.astype(qn_ref.dtype)
    pn_ref[...] = pn.astype(pn_ref.dtype)


def _normalize_qp_pos(q, p, inv_t, out_dtype, *, vmem_limit, block_rows=512):
    rows, d = q.shape
    tr = min(_round_up(max(int(block_rows), 8), 8), _round_up(rows, 8))
    rows_pad = _round_up(rows, tr)
    qp_ = _pad_rows(q, rows_pad)
    pp_ = _pad_rows(p, rows_pad)
    qn, pn, pos = pl.pallas_call(
        functools.partial(_norm_qp_kernel, inv_t=inv_t),
        out_shape=(jax.ShapeDtypeStruct((rows_pad, d), out_dtype),
                   jax.ShapeDtypeStruct((rows_pad, d), out_dtype),
                   jax.ShapeDtypeStruct((rows_pad, 1), jnp.float32)),
        grid=(rows_pad // tr,),
        in_specs=[pl.BlockSpec((tr, d), lambda i: (i, 0)),
                  pl.BlockSpec((tr, d), lambda i: (i, 0))],
        out_specs=(pl.BlockSpec((tr, d), lambda i: (i, 0)),
                   pl.BlockSpec((tr, d), lambda i: (i, 0)),
                   pl.BlockSpec((tr, 1), lambda i: (i, 0))),
        compiler_params=pltpu.CompilerParams(
            dimension_semantics=("parallel",),
            vmem_limit_bytes=vmem_limit),
    )(qp_, pp_)
    if rows_pad != rows:
        qn, pn, pos = qn[:rows], pn[:rows], pos[:rows]
    return qn, pn, pos


# ---------------------------------------------------------------------------
# Kernel 1b: plain row-wise L2 normalization (negative-key bank only).
# ---------------------------------------------------------------------------
def _normalize_kernel(x_ref, o_ref, *, scale):
    x = x_ref[...].astype(jnp.float32)
    ssq = jnp.sum(x * x, axis=-1, keepdims=True)
    inv = jax.lax.rsqrt(jnp.maximum(ssq, _EPS_SQ)) * jnp.float32(scale)
    o_ref[...] = (x * inv).astype(o_ref.dtype)


def _l2_normalize_scaled(x, scale, out_dtype, *, vmem_limit, block_rows=512):
    rows, d = x.shape
    tr = min(_round_up(max(int(block_rows), 8), 8), _round_up(rows, 8))
    rows_pad = _round_up(rows, tr)
    xp = _pad_rows(x, rows_pad)
    out = pl.pallas_call(
        functools.partial(_normalize_kernel, scale=scale),
        out_shape=jax.ShapeDtypeStruct((rows_pad, d), out_dtype),
        grid=(rows_pad // tr,),
        in_specs=[pl.BlockSpec((tr, d), lambda i: (i, 0))],
        out_specs=pl.BlockSpec((tr, d), lambda i: (i, 0)),
        compiler_params=pltpu.CompilerParams(
            dimension_semantics=("parallel",),
            vmem_limit_bytes=vmem_limit),
    )(xp)
    return out[:rows] if rows_pad != rows else out


# ---------------------------------------------------------------------------
# Kernel 2: flash-style InfoNCE row losses.
#   grid = (row_tiles, key_tiles), key axis innermost ("arbitrary").
#   pos_ref: (tm, 1) fp32 positive logits (1/T already folded in).
#   q_ref:   (tm, D) normalized query rows carrying 1/T.
#   k_ref:   (tn, D) normalized key tile (negatives, or positives of other
#            samples for the in-batch path).
#   Static-shift path: every logit is bounded by shift = 1/T, so no running
#   max is needed; accumulate s += sum(exp(logits - shift)).
#   Fallback path (extreme temperatures): classic online logsumexp.
# ---------------------------------------------------------------------------
def _infonce_flash_kernel(pos_ref, q_ref, k_ref, loss_ref,
                          s_scr, m_scr,
                          *, shift, include_pos, use_static_shift,
                          num_valid_keys, key_tile, mask_cols):
    ki = pl.program_id(1)
    last = pl.num_programs(1) - 1

    @pl.when(ki == 0)
    def _init():
        pos = pos_ref[...]
        if use_static_shift:
            if include_pos:
                # 'unpaired': logits = [pos | negatives]; seed s with the
                # positive column's mass.
                s_scr[...] = jnp.exp(pos - shift)
            else:
                # in-batch negatives: the positive is already a key column.
                s_scr[...] = jnp.zeros_like(pos)
        else:
            if include_pos:
                m_scr[...] = pos
                s_scr[...] = jnp.ones_like(pos)
            else:
                m_scr[...] = jnp.full_like(pos, _NEG_BIG)
                s_scr[...] = jnp.zeros_like(pos)

    # (tm, tn) logits tile: contract last dims directly (q @ k^T orientation).
    logits = jax.lax.dot_general(
        q_ref[...], k_ref[...],
        dimension_numbers=(((1,), (1,)), ((), ())),
        preferred_element_type=jnp.float32)

    def _accumulate(lg):
        if use_static_shift:
            s_scr[...] += jnp.sum(jnp.exp(lg - shift), axis=-1, keepdims=True)
        else:
            m_prev = m_scr[...]
            m_new = jnp.maximum(m_prev, jnp.max(lg, axis=-1, keepdims=True))
            alpha = jnp.exp(m_prev - m_new)
            s_scr[...] = alpha * s_scr[...] + jnp.sum(jnp.exp(lg - m_new),
                                                      axis=-1, keepdims=True)
            m_scr[...] = m_new

    if mask_cols:
        # Padded key columns only exist in the LAST key tile; gate the mask so
        # the hot loop carries no iota/compare/select work.
        @pl.when(ki == last)
        def _masked():
            col = ki * key_tile + jax.lax.broadcasted_iota(jnp.int32, logits.shape, 1)
            _accumulate(jnp.where(col < num_valid_keys, logits, _NEG_BIG))

        @pl.when(ki != last)
        def _unmasked():
            _accumulate(logits)
    else:
        _accumulate(logits)

    @pl.when(ki == last)
    def _finalize():
        # cross entropy with the positive as the target class
        if use_static_shift:
            loss_ref[...] = shift + jnp.log(s_scr[...]) - pos_ref[...]
        else:
            loss_ref[...] = m_scr[...] + jnp.log(s_scr[...]) - pos_ref[...]


# ---------------------------------------------------------------------------
# Wrapper: validation, padding, tiling, reduction.
# ---------------------------------------------------------------------------
def infonce(query, positive_key, negative_keys=None, *, temperature=0.1,
            reduction="mean", negative_mode="unpaired",
            block_rows=512, block_keys=2048, use_bf16_matmul=False):
    """Pallas-backed InfoNCE forward (matches the PyTorch module semantics)."""
    if query.ndim != 2 or positive_key.ndim != 2:
        raise ValueError("<query>/<positive_key> must have 2 dimensions.")
    if query.shape[0] != positive_key.shape[0]:
        raise ValueError("<query> and <positive_key> must have the same number of samples.")
    if query.shape[-1] != positive_key.shape[-1]:
        raise ValueError("feature dims must match")
    if negative_mode != "unpaired":
        # TODO(synk): negative_mode == 'paired' ((N, M, D) negatives) not implemented.
        raise NotImplementedError("only negative_mode='unpaired' is implemented")

    n, d = query.shape
    d_pad = _round_up(d, 128)
    # bf16 inputs (or explicit opt-in) use bf16 MXU operands (2x rate, half the
    # HBM/VMEM traffic); accumulation and softmax math stay fp32.
    compute_dtype = (jnp.bfloat16
                     if (query.dtype == jnp.bfloat16 or use_bf16_matmul)
                     else jnp.float32)
    itemsize = jnp.dtype(compute_dtype).itemsize

    vmem_limit = _scoped_vmem_limit()

    q = _pad_cols(query, d_pad)
    p = _pad_cols(positive_key, d_pad)
    inv_t = 1.0 / float(temperature)

    # Fused normalize + 1/T fold + positive logit (one HBM pass over q and p).
    qn, pn, pos = _normalize_qp_pos(q, p, inv_t, compute_dtype, vmem_limit=vmem_limit)

    if negative_keys is not None:
        if negative_keys.ndim != 2:
            raise ValueError("<negative_keys> must have 2 dimensions for 'unpaired'.")
        if negative_keys.shape[-1] != d:
            raise ValueError("feature dims must match")
        kn = _l2_normalize_scaled(_pad_cols(negative_keys, d_pad), 1.0,
                                  compute_dtype, vmem_limit=vmem_limit)
        include_pos = True
    else:
        kn = pn                      # other samples' positives act as negatives
        include_pos = False
    m = kn.shape[0]

    # --- tile selection ----------------------------------------------------
    budget = int(vmem_limit * 0.75)
    n8 = _round_up(n, 8)
    tm = min(_round_up(max(int(block_rows), 8), 8), n8)
    # v7x megacore: guarantee >= 2 row tiles (the row axis is the only
    # "parallel" axis) so the second TensorCore has work.
    if n8 >= 16:
        tm = min(tm, _round_up((n8 + 1) // 2, 8))
    # cap tm so the double-buffered q block uses at most ~half the budget
    max_tm = max(8, ((budget // 2) // (2 * d_pad * itemsize)) // 8 * 8)
    tm = min(tm, max_tm)

    m128 = _round_up(m, 128)
    tn = min(_round_up(max(int(block_keys), 128), 128), m128)
    k_budget = budget - (2 * tm * d_pad * itemsize + 6 * tm * 4)
    max_tn = max(128, (k_budget // (2 * d_pad * itemsize)) // 128 * 128)
    tn = min(tn, max_tn)

    n_pad = _round_up(n, tm)
    m_pad = _round_up(m, tn)

    # Padded query rows produce garbage-but-finite losses; they are sliced away
    # BEFORE the reduction (do not reduce over n_pad).
    pos_in = _pad_rows(pos, n_pad)
    q_in = _pad_rows(qn, n_pad)
    k_in = _pad_rows(kn, m_pad)

    # Static shift is valid while exp(-2/T) stays inside fp32 range; fall back
    # to the online-max path for extreme temperatures.
    use_static_shift = (2.0 * inv_t) <= 80.0

    kernel = functools.partial(
        _infonce_flash_kernel,
        shift=float(inv_t),
        include_pos=include_pos,
        use_static_shift=use_static_shift,
        num_valid_keys=m, key_tile=tn,
        mask_cols=(m_pad != m))

    per_sample = pl.pallas_call(
        kernel,
        out_shape=jax.ShapeDtypeStruct((n_pad, 1), jnp.float32),
        grid_spec=pltpu.PrefetchScalarGridSpec(
            num_scalar_prefetch=0,
            grid=(n_pad // tm, m_pad // tn),
            in_specs=[pl.BlockSpec((tm, 1), lambda qi, ki: (qi, 0)),
                      pl.BlockSpec((tm, d_pad), lambda qi, ki: (qi, 0)),
                      pl.BlockSpec((tn, d_pad), lambda qi, ki: (ki, 0))],
            out_specs=pl.BlockSpec((tm, 1), lambda qi, ki: (qi, 0)),
            scratch_shapes=[pltpu.VMEM((tm, 1), jnp.float32),   # s
                            pltpu.VMEM((tm, 1), jnp.float32)]), # m (fallback only)
        compiler_params=pltpu.CompilerParams(
            dimension_semantics=("parallel", "arbitrary"),
            vmem_limit_bytes=vmem_limit),
    )(pos_in, q_in, k_in)

    per_sample = per_sample[:n, 0]
    if reduction == "mean":
        return jnp.mean(per_sample)
    elif reduction == "sum":
        return jnp.sum(per_sample)
    elif reduction == "none":
        return per_sample
    raise ValueError("reduction must be one of ['none', 'sum', 'mean']")


# ---------------------------------------------------------------------------
# Pure-JAX reference (mirrors the PyTorch module) for sanity checking.
# ---------------------------------------------------------------------------
def _infonce_ref(query, positive_key, negative_keys=None, *, temperature=0.1):
    def norm(x):
        nrm = jnp.sqrt(jnp.sum(x * x, axis=-1, keepdims=True))
        return x / jnp.maximum(nrm, 1e-12)

    q, p = norm(query), norm(positive_key)
    if negative_keys is not None:
        nk = norm(negative_keys)
        pos = jnp.sum(q * p, axis=-1, keepdims=True)
        neg = q @ nk.T
        logits = jnp.concatenate([pos, neg], axis=1) / temperature
        labels = jnp.zeros((q.shape[0],), dtype=jnp.int32)
    else:
        logits = (q @ p.T) / temperature
        labels = jnp.arange(q.shape[0])
    lse = jax.scipy.special.logsumexp(logits, axis=-1)
    picked = jnp.take_along_axis(logits, labels[:, None], axis=-1)[:, 0]
    return jnp.mean(lse - picked)


if __name__ == "__main__":
    key = jax.random.PRNGKey(0)
    kq, kp, kn, kq2, kp2, kn2 = jax.random.split(key, 6)

    # --- small shapes, module defaults (static-shift path) ------------------
    N, M, D = 8, 16, 32
    query = jax.random.normal(kq, (N, D), dtype=jnp.float32)
    positive_key = jax.random.normal(kp, (N, D), dtype=jnp.float32)
    negative_keys = jax.random.normal(kn, (M, D), dtype=jnp.float32)

    loss_unpaired = infonce(query, positive_key, negative_keys, temperature=0.1)
    jax.block_until_ready(loss_unpaired)
    ref_unpaired = _infonce_ref(query, positive_key, negative_keys, temperature=0.1)
    assert jnp.allclose(loss_unpaired, ref_unpaired, atol=1e-4, rtol=1e-4), (
        loss_unpaired, ref_unpaired)

    # negative_keys=None -> in-batch negatives
    loss_self = infonce(query, positive_key, None, temperature=0.1)
    jax.block_until_ready(loss_self)
    ref_self = _infonce_ref(query, positive_key, None, temperature=0.1)
    assert jnp.allclose(loss_self, ref_self, atol=1e-4, rtol=1e-4), (loss_self, ref_self)

    # --- exercise the multi-tile grid + last-tile column masking path -------
    N2, M2, D2 = 40, 200, 96
    q2 = jax.random.normal(kq2, (N2, D2), dtype=jnp.float32)
    p2 = jax.random.normal(kp2, (N2, D2), dtype=jnp.float32)
    n2 = jax.random.normal(kn2, (M2, D2), dtype=jnp.float32)

    loss_tiled = infonce(q2, p2, n2, temperature=0.07,
                         block_rows=16, block_keys=128)
    jax.block_until_ready(loss_tiled)
    ref_tiled = _infonce_ref(q2, p2, n2, temperature=0.07)
    assert jnp.allclose(loss_tiled, ref_tiled, atol=1e-4, rtol=1e-4), (
        loss_tiled, ref_tiled)

    loss_self_tiled = infonce(q2, p2, None, temperature=0.07, block_rows=16)
    jax.block_until_ready(loss_self_tiled)
    ref_self_tiled = _infonce_ref(q2, p2, None, temperature=0.07)
    assert jnp.allclose(loss_self_tiled, ref_self_tiled, atol=1e-4, rtol=1e-4), (
        loss_self_tiled, ref_self_tiled)

    # --- extreme temperature -> online-max fallback path ---------------------
    loss_fallback = infonce(query, positive_key, negative_keys, temperature=0.02)
    jax.block_until_ready(loss_fallback)
    ref_fallback = _infonce_ref(query, positive_key, negative_keys, temperature=0.02)
    assert jnp.allclose(loss_fallback, ref_fallback, atol=1e-4, rtol=1e-4), (
        loss_fallback, ref_fallback)

    # --- bf16 MXU opt-in (fp32 accumulation / softmax) -----------------------
    loss_bf16 = infonce(q2, p2, n2, temperature=0.07, use_bf16_matmul=True)
    jax.block_until_ready(loss_bf16)
    assert jnp.allclose(loss_bf16, ref_tiled, atol=5e-2, rtol=5e-2), (
        loss_bf16, ref_tiled)

    print("KERNEL_OK")
</pallas_src>

<mosaic_0001>
module attributes {stable_mosaic.version = 11 : i64} {
  func.func @_norm_qp_kernel(%arg0: i32, %arg1: memref<8x128xf32, #tpu.memory_space<vmem>>, %arg2: memref<8x128xf32, #tpu.memory_space<vmem>>, %arg3: memref<8x128xf32, #tpu.memory_space<vmem>>, %arg4: memref<8x128xf32, #tpu.memory_space<vmem>>, %arg5: memref<8x1xf32, #tpu.memory_space<vmem>>) attributes {dimension_semantics = [#tpu.dimension_semantics<parallel>], iteration_bounds = array<i64: 1>, scalar_prefetch = 0 : i64, scratch_operands = 0 : i64, tpu.core_type = #tpu.core_type<tc>, window_params = [{transform_indices = @transform_0, window_bounds = array<i64: 8, 128>}, {transform_indices = @transform_1, window_bounds = array<i64: 8, 128>}, {transform_indices = @transform_2, window_bounds = array<i64: 8, 128>}, {transform_indices = @transform_3, window_bounds = array<i64: 8, 128>}, {transform_indices = @transform_4, window_bounds = array<i64: 8, 1>}]} {
    %c0 = arith.constant 0 : index
    %c0_0 = arith.constant 0 : index
    %0 = vector.load %arg1[%c0, %c0_0] : memref<8x128xf32, #tpu.memory_space<vmem>>, vector<8x128xf32>
    %c0_1 = arith.constant 0 : index
    %c0_2 = arith.constant 0 : index
    %1 = vector.load %arg2[%c0_1, %c0_2] : memref<8x128xf32, #tpu.memory_space<vmem>>, vector<8x128xf32>
    %2 = arith.mulf %0, %0 : vector<8x128xf32>
    %cst = arith.constant dense<0.000000e+00> : vector<8xf32>
    %3 = vector.multi_reduction <add>, %2, %cst [1] : vector<8x128xf32> to vector<8xf32>
    %4 = vector.shape_cast %3 : vector<8xf32> to vector<8x1xf32>
    %cst_3 = arith.constant 1.000000e-24 : f32
    %5 = vector.broadcast %cst_3 : f32 to vector<8x1xf32>
    %6 = arith.maximumf %4, %5 : vector<8x1xf32>
    %7 = math.rsqrt %6 : vector<8x1xf32>
    %8 = arith.mulf %1, %1 : vector<8x128xf32>
    %cst_4 = arith.constant dense<0.000000e+00> : vector<8xf32>
    %9 = vector.multi_reduction <add>, %8, %cst_4 [1] : vector<8x128xf32> to vector<8xf32>
    %10 = vector.shape_cast %9 : vector<8xf32> to vector<8x1xf32>
    %cst_5 = arith.constant 1.000000e-24 : f32
    %11 = vector.broadcast %cst_5 : f32 to vector<8x1xf32>
    %12 = arith.maximumf %10, %11 : vector<8x1xf32>
    %13 = math.rsqrt %12 : vector<8x1xf32>
    %cst_6 = arith.constant 1.000000e+01 : f32
    %14 = vector.broadcast %cst_6 : f32 to vector<8x1xf32>
    %15 = arith.mulf %7, %14 : vector<8x1xf32>
    %16 = vector.broadcast %15 : vector<8x1xf32> to vector<8x128xf32>
    %17 = arith.mulf %0, %16 : vector<8x128xf32>
    %18 = vector.broadcast %13 : vector<8x1xf32> to vector<8x128xf32>
    %19 = arith.mulf %1, %18 : vector<8x128xf32>
    %20 = arith.mulf %17, %19 : vector<8x128xf32>
    %cst_7 = arith.constant dense<0.000000e+00> : vector<8xf32>
    %21 = vector.multi_reduction <add>, %20, %cst_7 [1] : vector<8x128xf32> to vector<8xf32>
    %22 = vector.shape_cast %21 : vector<8xf32> to vector<8x1xf32>
    %c0_8 = arith.constant 0 : index
    %c0_9 = arith.constant 0 : index
    %23 = vector.load %arg5[%c0_8, %c0_9] : memref<8x1xf32, #tpu.memory_space<vmem>>, vector<8x1xf32>
    tpu.vector_store %arg5[%c0_8, %c0_9], %22 {strides = array<i32>} : memref<8x1xf32, #tpu.memory_space<vmem>>, vector<8x1xf32>,
    %c0_10 = arith.constant 0 : index
    %c0_11 = arith.constant 0 : index
    %24 = vector.load %arg3[%c0_10, %c0_11] : memref<8x128xf32, #tpu.memory_space<vmem>>, vector<8x128xf32>
    tpu.vector_store %arg3[%c0_10, %c0_11], %17 {strides = array<i32>} : memref<8x128xf32, #tpu.memory_space<vmem>>, vector<8x128xf32>,
    %c0_12 = arith.constant 0 : index
    %c0_13 = arith.constant 0 : index
    %25 = vector.load %arg4[%c0_12, %c0_13] : memref<8x128xf32, #tpu.memory_space<vmem>>, vector<8x128xf32>
    tpu.vector_store %arg4[%c0_12, %c0_13], %19 {strides = array<i32>} : memref<8x128xf32, #tpu.memory_space<vmem>>, vector<8x128xf32>,
    return
  }
  func.func @transform_0(%arg0: i32) -> (i32, i32) {
    %c0_i32 = arith.constant 0 : i32
    %c0_i32_0 = arith.constant 0 : i32
    return %arg0, %c0_i32 : i32, i32
  }
  func.func @transform_1(%arg0: i32) -> (i32, i32) {
    %c0_i32 = arith.constant 0 : i32
    %c0_i32_0 = arith.constant 0 : i32
    return %arg0, %c0_i32 : i32, i32
  }
  func.func @transform_2(%arg0: i32) -> (i32, i32) {
    %c0_i32 = arith.constant 0 : i32
    %c0_i32_0 = arith.constant 0 : i32
    return %arg0, %c0_i32 : i32, i32
  }
  func.func @transform_3(%arg0: i32) -> (i32, i32) {
    %c0_i32 = arith.constant 0 : i32
    %c0_i32_0 = arith.constant 0 : i32
    return %arg0, %c0_i32 : i32, i32
  }
  func.func @transform_4(%arg0: i32) -> (i32, i32) {
    %c0_i32 = arith.constant 0 : i32
    %c0_i32_0 = arith.constant 0 : i32
    return %arg0, %c0_i32 : i32, i32
  }
}

</mosaic_0001>

<bundles_post_ra>
// kernel: tpu_custom_call.1
= control target key start
LH: loop header
LB: loop body
LE: loop exit
PB: predicated region body
PF: predicated region fallthrough
CT: control target
= control target key end

     0   :  { %10 = vsyncpa [#allocation3], 0  ;;  %s278_s0 = inlined_call_operand.hbm [shape: f32[8,128], index: 0, kind: input, shape index: {}]   ;;  %s279_s1 = inlined_call_operand.hbm [shape: f32[8,128], index: 1, kind: input, shape index: {}]   ;;  %s280_s2 = inlined_call_operand.hbm [shape: f32[8,128], index: 2, kind: output, shape index: {0}]   ;;  %s281_s3 = inlined_call_operand.hbm [shape: f32[8,128], index: 3, kind: output, shape index: {1}]   ;;  %s282_s4 = inlined_call_operand.vmem [shape: f32[8,1], index: 4, kind: output, shape index: {2}]  }
   0x1   :  { %11 = vsyncpa [#allocation6], 0 }
   0x2   :  { %12 = vsyncpa [#allocation4], 0 }
   0x3   :  { %13 = vsyncpa [#allocation9], 0  ;;  %s19_s17 = sshll.u32 %s278_s0, 4  ;;  %s234_s18 = smov [#allocation2]   ;;  %s20_s17 = int_to_ptr.hbm [resolvable:$true] %s19_s17 }
   0x4   :  { %s21_s19 = sshll.u32 %s234_s18, 4  ;;  %s30_s22 = sshll.u32 %s279_s1, 4  ;;  %s22_s19 = int_to_ptr.vmem [resolvable:$true] %s21_s19  ;;  %s31_s22 = int_to_ptr.hbm [resolvable:$true] %s30_s22 }
   0x5   :  { %24 = dma.hbm_to_vmem [thread:$0]  %s20_s17, 128, %s22_s19, [#allocation3]  }
   0x6   :  { %s235_s23 = smov [#allocation5]  }
   0x7   :  { %s32_s24 = sshll.u32 %s235_s23, 4  ;;  %s33_s24 = int_to_ptr.vmem [resolvable:$true] %s32_s24 }
   0x8   :  { %35 = dma.hbm_to_vmem [thread:$0]  %s31_s22, 128, %s33_s24, [#allocation6]  }
   0x9   :  { %226 = dma.done.wait [#allocation3], 128  }
   0xa   :  { %227 = vsyncadd [#allocation3], 4294967168 }
   0xb   :  { %228 = dma.done.wait [#allocation6], 128  }
   0xc   :  { %229 = vsyncadd [#allocation6], 4294967168  ;;  %v44_v0 = vld [vmem:[#allocation2] sm:$0xff]  ;;  %v45_v2 = vld [vmem:[#allocation5] sm:$0xff]  ;;  %s236_s0 = smov [#allocation7]   ;;  %s91_s27 = sshll.u32 %s280_s2, 4  ;;  %s92_s27 = int_to_ptr.hbm [resolvable:$true] %s91_s27 }
   0xd   :  { %v46_v1 = vmul.f32 %v44_v0, %v44_v0  ;;  %v60_v3 = vmul.f32 %v45_v2, %v45_v2  ;;  %s89_s1 = sshll.u32 %s236_s0, 4  ;;  %s237_s28 = smov [#allocation8]   ;;  %vm80_vm6 = vcmask 7168   ;;  %s90_s1 = int_to_ptr.vmem [resolvable:$true] %s89_s1 }
   0xe   :  { %s100_s29 = sshll.u32 %s237_s28, 4  ;;  %s102_s6 = sshll.u32 %s281_s3, 4  ;;  %s101_s29 = int_to_ptr.vmem [resolvable:$true] %s100_s29  ;;  %s103_s6 = int_to_ptr.hbm [resolvable:$true] %s102_s6 }
   0xf   :  { %47 = vadd.xlane.f32.xlu0 %v46_v1 }
  0x17   :  { %61 = vadd.xlane.f32.xlu0 %v60_v3 }
  0x82   :  { %v48_v4 = vpop.xlane.xlu0 %47 }
  0x83   :  { %v49_v5 = vmax.f32 %v48_v4, 1e-24 }
  0x85   :  { %126 = vrsqrt.f32 %v49_v5  ;;  %vm56_vm1 = vweird.f32 %v49_v5 }
  0x8a   :  { %v62_v6 = vpop.xlane.xlu0 %61 }
  0x8b   :  { %v127_v7 = vpop.eup %126  ;;  %v63_v8 = vmax.f32 %v62_v6, 1e-24 }
  0x8c   :  { %v51_v9 = vmul.f32 %v127_v7, %v49_v5  ;;  %vm57_vm0 = vweird.f32 %v127_v7 }
  0x8d   :  { %128 = vrsqrt.f32 %v63_v8  ;;  %vm58_vm2 = vmor %vm56_vm1, %vm57_vm0  ;;  %vm70_vm4 = vweird.f32 %v63_v8 }
  0x8e   :  { %v52_v10 = vmul.f32 %v127_v7, %v51_v9 }
  0x90   :  { %v53_v11 = vmul.f32 0.5, %v52_v10 }
  0x92   :  { %v54_v12 = vsub.f32 1.5, %v53_v11 }
  0x93   :  { %v129_v13 = vpop.eup %128 }
  0x94   :  { %v65_v14 = vmul.f32 %v129_v13, %v63_v8  ;;  %v55_v15 = vmul.f32 %v127_v7, %v54_v12  ;;  %vm71_vm3 = vweird.f32 %v129_v13 }
  0x95   :  { %vm72_vm5 = vmor %vm70_vm4, %vm71_vm3 }
  0x96   :  { %v66_v16 = vmul.f32 %v129_v13, %v65_v14  ;;  %v59_v17 = vsel %vm58_vm2, %v127_v7, %v55_v15 }
  0x97   :  { %v74_v18 = vmul.f32 10.0, %v59_v17 }
  0x98   :  { %v67_v19 = vmul.f32 0.5, %v66_v16 }
  0x99   :  { %v75_v20 = vmul.f32 %v74_v18, %v44_v0 }
  0x9a   :  { %v68_v21 = vsub.f32 1.5, %v67_v19 }
  0x9b   :  { %82 = vst [vmem:[#allocation7] sm:$0xff] %v75_v20 }
  0x9c   :  { %v69_v22 = vmul.f32 %v129_v13, %v68_v21  ;;  %94 = dma.vmem_to_hbm [thread:$0]  %s90_s1, 128, %s92_s27, [#allocation4]  }
  0x9e   :  { %v73_v23 = vsel %vm72_vm5, %v129_v13, %v69_v22 }
  0x9f   :  { %v76_v24 = vmul.f32 %v73_v23, %v45_v2 }
  0xa1   :  { %v77_v25 = vmul.f32 %v76_v24, %v75_v20  ;;  %83 = vst [vmem:[#allocation8] sm:$0xff] %v76_v24 }
  0xa2   :  { %105 = dma.vmem_to_hbm [thread:$0]  %s101_s29, 128, %s103_s6, [#allocation9]  }
  0xa3   :  { %78 = vadd.xlane.f32.xlu1 %v77_v25 }
 0x116   :  { %v79_v26 = vpop.xlane.xlu1 %78 }
 0x117   :  { %81 = vst.msk [vmem:[%s282_s4] sm:$0xff] %vm80_vm6, %v79_v26 }
 0x118   :  { %230 = dma.done.wait [#allocation4], 128  }
 0x119   :  { %231 = vsyncadd [#allocation4], 4294967168 }
 0x11a   :  { %232 = dma.done.wait [#allocation9], 128  }
 0x11b   :  { %233 = vsyncadd [#allocation9], 4294967168 }
 0x11c   :  { %118 = vsyncpa [#allocation3], 1 }
 0x11d   :  { %119 = vsyncpa [#allocation6], 1 }
 0x11e   :  { %120 = vsyncpa [#allocation4], 1 }
 0x11f   :  { %121 = vsyncpa [#allocation9], 1 }

</bundles_post_ra>
